<compile_context>
chip_gen: v7x
topology: tpu7x:2x2x1
jax: 0.10.0
libtpu: 0.0.40
codegen_flags: <defaults>
</compile_context>

<pallas_src>
import jax
import jax.numpy as jnp
from jax.experimental import pallas as pl
from jax.experimental.pallas import tpu as pltpu


def _round_up(x, m):
    return (x + m - 1) // m * m


def _vmem_capacity_bytes():
    try:
        return int(pltpu.get_tpu_info().vmem_capacity_bytes)
    except Exception:
        return 64 << 20  # conservative: v7x per-TensorCore VMEM


def _num_tensorcores():
    # v4/v5p (megacore) and v7x have 2 TensorCores per chip; v5e/v6e have 1.
    try:
        kind = jax.devices()[0].device_kind.lower()
    except Exception:
        return 1
    if "v4" in kind or "v5p" in kind or "7" in kind:
        return 2
    return 1


def mlp_encoder_kernel(x_ref, w1_ref, b1_ref, w2_ref, b2_ref, o_ref, h_ref):
    # Hidden activation is computed once per M-tile (inner N index j == 0) and
    # kept resident in VMEM scratch across the N (output-column) grid axis.
    @pl.when(pl.program_id(1) == 0)
    def _():
        h = jnp.dot(x_ref[...], w1_ref[...], preferred_element_type=jnp.float32)
        # Bias add + ReLU in f32 on the accumulator; store in MXU input dtype.
        h_ref[...] = jnp.maximum(h + b1_ref[...], 0.0).astype(h_ref.dtype)

    y = jnp.dot(h_ref[...], w2_ref[...], preferred_element_type=jnp.float32)
    o_ref[...] = (y + b2_ref[...]).astype(o_ref.dtype)


def mlp_encoder(x, w1, b1, w2, b2, *, max_tile_m=512, max_tile_n=512):
    """Fused Linear -> ReLU -> Linear.

    x : [B, in_dim]
    w1: [in_dim, out_dim]   (pre-transposed vs. PyTorch's [out, in])
    b1: [out_dim] or [1, out_dim]
    w2: [out_dim, out_dim]
    b2: [out_dim] or [1, out_dim]
    Returns [B, out_dim].
    """
    B, in_dim = x.shape
    out_dim = w1.shape[1]
    dtype = x.dtype
    itemsize = jnp.dtype(dtype).itemsize

    # --- lane-dense padding targets: feature dims -> multiples of 128 -------
    in_p = _round_up(in_dim, 128)
    hid_p = _round_up(out_dim, 128)          # hidden == out_dim for this module
    out_p = _round_up(out_dim, 128)

    # --- tile_n: largest multiple of 128 that DIVIDES out_p (no wasted cols) -
    tile_n = 128
    for cand in range(min(_round_up(max_tile_n, 128), out_p), 127, -128):
        if out_p % cand == 0:
            tile_n = cand
            break

    # --- tile_m --------------------------------------------------------------
    n_cores = _num_tensorcores()
    B8 = _round_up(B, 8)
    tile_m = min(B8, max_tile_m)
    if n_cores >= 2 and B8 >= 16:
        # Guarantee >= 2 blocks on the "parallel" M axis so both cores work.
        tile_m = min(tile_m, _round_up(-(-B8 // 2), 8))

    # --- VMEM budget (physical-capacity aware) -------------------------------
    vmem_cap = _vmem_capacity_bytes()
    budget = min(int(vmem_cap * 0.8), 100 << 20)

    def _est(tm):
        return (2 * itemsize * tm * in_p          # x tile (double buffered)
                + 1 * itemsize * in_p * hid_p     # W1 (single buffered, resident)
                + 1 * 4 * hid_p                   # b1 (single buffered)
                + 2 * itemsize * hid_p * tile_n   # W2 N-tile (double buffered)
                + 2 * 4 * tile_n                  # b2 N-tile
                + 2 * itemsize * tm * tile_n      # output tile
                + itemsize * tm * hid_p)          # hidden scratch (single)

    while tile_m > 8 and _est(tile_m) > budget:
        tile_m = max(8, _round_up(tile_m // 2, 8))

    B_p = _round_up(B8, tile_m)
    vmem_limit = max(16 << 20, min(int(_est(tile_m) * 1.5) + (2 << 20), budget))

    # --- zero-pad operands only when necessary (padding contributes zero) ---
    def _pad2d(a, rows, cols, dt):
        a = jnp.asarray(a)
        if a.shape == (rows, cols) and a.dtype == dt:
            return a
        return jnp.zeros((rows, cols), dt).at[:a.shape[0], :a.shape[1]].set(
            a.astype(dt))

    xp = _pad2d(x, B_p, in_p, dtype)
    w1p = _pad2d(w1, in_p, hid_p, dtype)
    w2p = _pad2d(w2, hid_p, out_p, dtype)
    b1p = _pad2d(jnp.asarray(b1).reshape(1, -1), 1, hid_p, jnp.float32)
    b2p = _pad2d(jnp.asarray(b2).reshape(1, -1), 1, out_p, jnp.float32)

    grid = (B_p // tile_m, out_p // tile_n)

    def _call(single_buffer_resident):
        def resident_spec(shape):
            if single_buffer_resident:
                return pl.BlockSpec(shape, lambda i, j: (0, 0),
                                    pipeline_mode=pl.Buffered(1))
            return pl.BlockSpec(shape, lambda i, j: (0, 0))

        return pl.pallas_call(
            mlp_encoder_kernel,
            out_shape=jax.ShapeDtypeStruct((B_p, out_p), dtype),
            grid_spec=pltpu.PrefetchScalarGridSpec(
                num_scalar_prefetch=0,
                grid=grid,
                in_specs=[
                    # batch-tiled activations
                    pl.BlockSpec((tile_m, in_p), lambda i, j: (i, 0)),
                    # layer-1 weight/bias: constant index -> single buffer
                    resident_spec((in_p, hid_p)),
                    resident_spec((1, hid_p)),
                    # layer-2 weight/bias: tiled along the output (N) axis
                    pl.BlockSpec((hid_p, tile_n), lambda i, j: (0, j)),
                    pl.BlockSpec((1, tile_n), lambda i, j: (0, j)),
                ],
                out_specs=pl.BlockSpec((tile_m, tile_n), lambda i, j: (i, j)),
                scratch_shapes=[pltpu.VMEM((tile_m, hid_p), dtype)],
            ),
            compiler_params=pltpu.CompilerParams(
                dimension_semantics=("parallel", "arbitrary"),
                vmem_limit_bytes=vmem_limit),
        )(xp, w1p, b1p, w2p, b2p)

    try:
        out_padded = _call(True)
    except Exception:
        # Fallback if this JAX build rejects pipeline_mode / Buffered(1).
        out_padded = _call(False)

    if B_p == B and out_p == out_dim:
        return out_padded
    return out_padded[:B, :out_dim]


if __name__ == "__main__":
    # Small shapes consistent with MLPEncoder(in_dim=32, out_dim=32)
    B, in_dim, out_dim = 16, 32, 32

    key = jax.random.PRNGKey(0)
    kx, kw1, kb1, kw2, kb2 = jax.random.split(key, 5)

    x = jax.random.normal(kx, (B, in_dim), dtype=jnp.float32)
    # Deterministic init; stored transposed relative to PyTorch's (out, in).
    w1 = jax.random.normal(kw1, (in_dim, out_dim), dtype=jnp.float32) * 0.1
    b1 = jax.random.normal(kb1, (out_dim,), dtype=jnp.float32) * 0.1
    w2 = jax.random.normal(kw2, (out_dim, out_dim), dtype=jnp.float32) * 0.1
    b2 = jax.random.normal(kb2, (out_dim,), dtype=jnp.float32) * 0.1

    out = mlp_encoder(x, w1, b1, w2, b2)
    out = jax.block_until_ready(out)

    # Pure-JAX reference check (same math as the PyTorch forward)
    ref = jnp.maximum(x @ w1 + b1[None, :], 0.0) @ w2 + b2[None, :]
    assert out.shape == (B, out_dim)
    assert jnp.allclose(out, ref, atol=1e-5, rtol=1e-5)

    print("KERNEL_OK")
</pallas_src>

<mosaic_0001>
module attributes {stable_mosaic.version = 11 : i64} {
  func.func @mlp_encoder_kernel(%arg0: i32, %arg1: i32, %arg2: memref<16x128xf32, #tpu.memory_space<vmem>>, %arg3: memref<128x128xf32, #tpu.memory_space<vmem>>, %arg4: memref<1x128xf32, #tpu.memory_space<vmem>>, %arg5: memref<128x128xf32, #tpu.memory_space<vmem>>, %arg6: memref<1x128xf32, #tpu.memory_space<vmem>>, %arg7: memref<16x128xf32, #tpu.memory_space<vmem>>, %arg8: memref<16x128xf32, #tpu.memory_space<vmem>>) attributes {dimension_semantics = [#tpu.dimension_semantics<parallel>, #tpu.dimension_semantics<arbitrary>], iteration_bounds = array<i64: 1, 1>, scalar_prefetch = 0 : i64, scratch_operands = 1 : i64, tpu.core_type = #tpu.core_type<tc>, window_params = [{transform_indices = @transform_0, window_bounds = array<i64: 16, 128>}, {pipeline_mode = #tpu.pipeline_mode<synchronous>, transform_indices = @transform_1, window_bounds = array<i64: 128, 128>}, {pipeline_mode = #tpu.pipeline_mode<synchronous>, transform_indices = @transform_2, window_bounds = array<i64: 1, 128>}, {transform_indices = @transform_3, window_bounds = array<i64: 128, 128>}, {transform_indices = @transform_4, window_bounds = array<i64: 1, 128>}, {transform_indices = @transform_5, window_bounds = array<i64: 16, 128>}]} {
    %c0_i32 = arith.constant 0 : i32
    %0 = arith.cmpi eq, %arg1, %c0_i32 : i32
    %1 = arith.extui %0 : i1 to i32
    %c0_i32_0 = arith.constant 0 : i32
    %2 = arith.cmpi ne, %1, %c0_i32_0 : i32
    scf.if %2 {
      %c0_8 = arith.constant 0 : index
      %c0_9 = arith.constant 0 : index
      %10 = vector.load %arg2[%c0_8, %c0_9] : memref<16x128xf32, #tpu.memory_space<vmem>>, vector<16x128xf32>
      %c0_10 = arith.constant 0 : index
      %c0_11 = arith.constant 0 : index
      %11 = vector.load %arg3[%c0_10, %c0_11] : memref<128x128xf32, #tpu.memory_space<vmem>>, vector<128x128xf32>
      %cst_12 = arith.constant dense<0.000000e+00> : vector<16x128xf32>
      %12 = tpu.matmul %10, %11, %cst_12 {dimension_numbers = #tpu.dot_dimension_numbers<[1], [0], [0], [1], [0, 0, 1, 1], [], []>} : vector<16x128xf32>, vector<128x128xf32>, vector<16x128xf32> -> vector<16x128xf32>
      %c0_13 = arith.constant 0 : index
      %c0_14 = arith.constant 0 : index
      %13 = vector.load %arg4[%c0_13, %c0_14] : memref<1x128xf32, #tpu.memory_space<vmem>>, vector<1x128xf32>
      %14 = vector.broadcast %13 : vector<1x128xf32> to vector<16x128xf32>
      %15 = arith.addf %12, %14 : vector<16x128xf32>
      %cst_15 = arith.constant 0.000000e+00 : f32
      %16 = vector.broadcast %cst_15 : f32 to vector<16x128xf32>
      %17 = arith.maximumf %15, %16 : vector<16x128xf32>
      %c0_16 = arith.constant 0 : index
      %c0_17 = arith.constant 0 : index
      %18 = vector.load %arg8[%c0_16, %c0_17] : memref<16x128xf32, #tpu.memory_space<vmem>>, vector<16x128xf32>
      tpu.vector_store %arg8[%c0_16, %c0_17], %17 {strides = array<i32>} : memref<16x128xf32, #tpu.memory_space<vmem>>, vector<16x128xf32>,
    } else {
    }
    %c0 = arith.constant 0 : index
    %c0_1 = arith.constant 0 : index
    %3 = vector.load %arg8[%c0, %c0_1] : memref<16x128xf32, #tpu.memory_space<vmem>>, vector<16x128xf32>
    %c0_2 = arith.constant 0 : index
    %c0_3 = arith.constant 0 : index
    %4 = vector.load %arg5[%c0_2, %c0_3] : memref<128x128xf32, #tpu.memory_space<vmem>>, vector<128x128xf32>
    %cst = arith.constant dense<0.000000e+00> : vector<16x128xf32>
    %5 = tpu.matmul %3, %4, %cst {dimension_numbers = #tpu.dot_dimension_numbers<[1], [0], [0], [1], [0, 0, 1, 1], [], []>} : vector<16x128xf32>, vector<128x128xf32>, vector<16x128xf32> -> vector<16x128xf32>
    %c0_4 = arith.constant 0 : index
    %c0_5 = arith.constant 0 : index
    %6 = vector.load %arg6[%c0_4, %c0_5] : memref<1x128xf32, #tpu.memory_space<vmem>>, vector<1x128xf32>
    %7 = vector.broadcast %6 : vector<1x128xf32> to vector<16x128xf32>
    %8 = arith.addf %5, %7 : vector<16x128xf32>
    %c0_6 = arith.constant 0 : index
    %c0_7 = arith.constant 0 : index
    %9 = vector.load %arg7[%c0_6, %c0_7] : memref<16x128xf32, #tpu.memory_space<vmem>>, vector<16x128xf32>
    tpu.vector_store %arg7[%c0_6, %c0_7], %8 {strides = array<i32>} : memref<16x128xf32, #tpu.memory_space<vmem>>, vector<16x128xf32>,
    return
  }
  func.func @transform_0(%arg0: i32, %arg1: i32) -> (i32, i32) {
    %c0_i32 = arith.constant 0 : i32
    %c0_i32_0 = arith.constant 0 : i32
    return %arg0, %c0_i32 : i32, i32
  }
  func.func @transform_1(%arg0: i32, %arg1: i32) -> (i32, i32) {
    %c0_i32 = arith.constant 0 : i32
    %c0_i32_0 = arith.constant 0 : i32
    %c0_i32_1 = arith.constant 0 : i32
    return %c0_i32, %c0_i32_0 : i32, i32
  }
  func.func @transform_2(%arg0: i32, %arg1: i32) -> (i32, i32) {
    %c0_i32 = arith.constant 0 : i32
    %c0_i32_0 = arith.constant 0 : i32
    %c0_i32_1 = arith.constant 0 : i32
    return %c0_i32, %c0_i32_0 : i32, i32
  }
  func.func @transform_3(%arg0: i32, %arg1: i32) -> (i32, i32) {
    %c0_i32 = arith.constant 0 : i32
    %c0_i32_0 = arith.constant 0 : i32
    return %c0_i32, %arg1 : i32, i32
  }
  func.func @transform_4(%arg0: i32, %arg1: i32) -> (i32, i32) {
    %c0_i32 = arith.constant 0 : i32
    %c0_i32_0 = arith.constant 0 : i32
    return %c0_i32, %arg1 : i32, i32
  }
  func.func @transform_5(%arg0: i32, %arg1: i32) -> (i32, i32) {
    %c0_i32 = arith.constant 0 : i32
    return %arg0, %arg1 : i32, i32
  }
}

module attributes {stable_mosaic.version = 11 : i64} {
  func.func @mlp_encoder_kernel(%arg0: i32, %arg1: i32, %arg2: memref<16x128xf32, #tpu.memory_space<vmem>>, %arg3: memref<128x128xf32, #tpu.memory_space<vmem>>, %arg4: memref<1x128xf32, #tpu.memory_space<vmem>>, %arg5: memref<128x128xf32, #tpu.memory_space<vmem>>, %arg6: memref<1x128xf32, #tpu.memory_space<vmem>>, %arg7: memref<16x128xf32, #tpu.memory_space<vmem>>, %arg8: memref<16x128xf32, #tpu.memory_space<vmem>>) attributes {dimension_semantics = [#tpu.dimension_semantics<parallel>, #tpu.dimension_semantics<arbitrary>], iteration_bounds = array<i64: 1, 1>, scalar_prefetch = 0 : i64, scratch_operands = 1 : i64, tpu.core_type = #tpu.core_type<tc>, window_params = [{transform_indices = @transform_0, window_bounds = array<i64: 16, 128>}, {pipeline_mode = #tpu.pipeline_mode<synchronous>, transform_indices = @transform_1, window_bounds = array<i64: 128, 128>}, {pipeline_mode = #tpu.pipeline_mode<synchronous>, transform_indices = @transform_2, window_bounds = array<i64: 1, 128>}, {transform_indices = @transform_3, window_bounds = array<i64: 128, 128>}, {transform_indices = @transform_4, window_bounds = array<i64: 1, 128>}, {transform_indices = @transform_5, window_bounds = array<i64: 16, 128>}]} {
    %c0_i32 = arith.constant 0 : i32
    %0 = arith.cmpi eq, %arg1, %c0_i32 : i32
    %1 = arith.extui %0 : i1 to i32
    %c0_i32_0 = arith.constant 0 : i32
    %2 = arith.cmpi ne, %1, %c0_i32_0 : i32
    scf.if %2 {
      %c0_8 = arith.constant 0 : index
      %c0_9 = arith.constant 0 : index
      %10 = vector.load %arg2[%c0_8, %c0_9] : memref<16x128xf32, #tpu.memory_space<vmem>>, vector<16x128xf32>
      %c0_10 = arith.constant 0 : index
      %c0_11 = arith.constant 0 : index
      %11 = vector.load %arg3[%c0_10, %c0_11] : memref<128x128xf32, #tpu.memory_space<vmem>>, vector<128x128xf32>
      %cst_12 = arith.constant dense<0.000000e+00> : vector<16x128xf32>
      %12 = tpu.matmul %10, %11, %cst_12 {dimension_numbers = #tpu.dot_dimension_numbers<[1], [0], [0], [1], [0, 0, 1, 1], [], []>} : vector<16x128xf32>, vector<128x128xf32>, vector<16x128xf32> -> vector<16x128xf32>
      %c0_13 = arith.constant 0 : index
      %c0_14 = arith.constant 0 : index
      %13 = vector.load %arg4[%c0_13, %c0_14] : memref<1x128xf32, #tpu.memory_space<vmem>>, vector<1x128xf32>
      %14 = vector.broadcast %13 : vector<1x128xf32> to vector<16x128xf32>
      %15 = arith.addf %12, %14 : vector<16x128xf32>
      %cst_15 = arith.constant 0.000000e+00 : f32
      %16 = vector.broadcast %cst_15 : f32 to vector<16x128xf32>
      %17 = arith.maximumf %15, %16 : vector<16x128xf32>
      %c0_16 = arith.constant 0 : index
      %c0_17 = arith.constant 0 : index
      %18 = vector.load %arg8[%c0_16, %c0_17] : memref<16x128xf32, #tpu.memory_space<vmem>>, vector<16x128xf32>
      tpu.vector_store %arg8[%c0_16, %c0_17], %17 {strides = array<i32>} : memref<16x128xf32, #tpu.memory_space<vmem>>, vector<16x128xf32>,
    } else {
    }
    %c0 = arith.constant 0 : index
    %c0_1 = arith.constant 0 : index
    %3 = vector.load %arg8[%c0, %c0_1] : memref<16x128xf32, #tpu.memory_space<vmem>>, vector<16x128xf32>
    %c0_2 = arith.constant 0 : index
    %c0_3 = arith.constant 0 : index
    %4 = vector.load %arg5[%c0_2, %c0_3] : memref<128x128xf32, #tpu.memory_space<vmem>>, vector<128x128xf32>
    %cst = arith.constant dense<0.000000e+00> : vector<16x128xf32>
    %5 = tpu.matmul %3, %4, %cst {dimension_numbers = #tpu.dot_dimension_numbers<[1], [0], [0], [1], [0, 0, 1, 1], [], []>} : vector<16x128xf32>, vector<128x128xf32>, vector<16x128xf32> -> vector<16x128xf32>
    %c0_4 = arith.constant 0 : index
    %c0_5 = arith.constant 0 : index
    %6 = vector.load %arg6[%c0_4, %c0_5] : memref<1x128xf32, #tpu.memory_space<vmem>>, vector<1x128xf32>
    %7 = vector.broadcast %6 : vector<1x128xf32> to vector<16x128xf32>
    %8 = arith.addf %5, %7 : vector<16x128xf32>
    %c0_6 = arith.constant 0 : index
    %c0_7 = arith.constant 0 : index
    %9 = vector.load %arg7[%c0_6, %c0_7] : memref<16x128xf32, #tpu.memory_space<vmem>>, vector<16x128xf32>
    tpu.vector_store %arg7[%c0_6, %c0_7], %8 {strides = array<i32>} : memref<16x128xf32, #tpu.memory_space<vmem>>, vector<16x128xf32>,
    return
  }
  func.func @transform_0(%arg0: i32, %arg1: i32) -> (i32, i32) {
    %c0_i32 = arith.constant 0 : i32
    %c0_i32_0 = arith.constant 0 : i32
    return %arg0, %c0_i32 : i32, i32
  }
  func.func @transform_1(%arg0: i32, %arg1: i32) -> (i32, i32) {
    %c0_i32 = arith.constant 0 : i32
    %c0_i32_0 = arith.constant 0 : i32
    %c0_i32_1 = arith.constant 0 : i32
    return %c0_i32, %c0_i32_0 : i32, i32
  }
  func.func @transform_2(%arg0: i32, %arg1: i32) -> (i32, i32) {
    %c0_i32 = arith.constant 0 : i32
    %c0_i32_0 = arith.constant 0 : i32
    %c0_i32_1 = arith.constant 0 : i32
    return %c0_i32, %c0_i32_0 : i32, i32
  }
  func.func @transform_3(%arg0: i32, %arg1: i32) -> (i32, i32) {
    %c0_i32 = arith.constant 0 : i32
    %c0_i32_0 = arith.constant 0 : i32
    return %c0_i32, %arg1 : i32, i32
  }
  func.func @transform_4(%arg0: i32, %arg1: i32) -> (i32, i32) {
    %c0_i32 = arith.constant 0 : i32
    %c0_i32_0 = arith.constant 0 : i32
    return %c0_i32, %arg1 : i32, i32
  }
  func.func @transform_5(%arg0: i32, %arg1: i32) -> (i32, i32) {
    %c0_i32 = arith.constant 0 : i32
    return %arg0, %arg1 : i32, i32
  }
}

</mosaic_0001>

<bundles_post_ra>
// kernel: tpu_custom_call.1
= control target key start
LH: loop header
LB: loop body
LE: loop exit
PB: predicated region body
PF: predicated region fallthrough
CT: control target
= control target key end

     0   :  { %10 = vsyncpa [#allocation4], 0  ;;  %s671_s0 = inlined_call_operand.hbm [shape: f32[16,128], index: 0, kind: input, shape index: {}]   ;;  %s672_s1 = inlined_call_operand.hbm [shape: f32[128,128], index: 1, kind: input, shape index: {}]   ;;  %s673_s2 = inlined_call_operand.vmem [shape: f32[1,128], index: 2, kind: input, shape index: {}]   ;;  %s674_s3 = inlined_call_operand.hbm [shape: f32[128,128], index: 3, kind: input, shape index: {}]   ;;  %s675_s4 = inlined_call_operand.vmem [shape: f32[1,128], index: 4, kind: input, shape index: {}]   ;;  %s676_s5 = inlined_call_operand.hbm [shape: f32[16,128], index: 5, kind: output, shape index: {}]  }
   0x1   :  { %11 = vsyncpa [#allocation7], 0 }
   0x2   :  { %12 = vsyncpa [#allocation5], 0  ;;  %s562_s18 = smov [#allocation6]   ;;  %s563_s20 = smov [#allocation3]  }
   0x3   :  { %s30_s19 = sshll.u32 %s562_s18, 4  ;;  %s18_s21 = sshll.u32 %s563_s20, 4  ;;  %s31_s19 = int_to_ptr.vmem [resolvable:$true] %s30_s19  ;;  %s598_s21 = int_to_ptr.vmem [resolvable:$true] %s18_s21 }
   0x4   :  { %s468_s24 = scalar_lea.hbm %s672_s1, 2048 }
   0x5   :  { %p469_p0 = scmp.ne.s32.totalorder %s672_s1, %s468_s24  ;;  %p472_p1 = scmp.lt.u32.totalorder %s468_s24, %s672_s1 }
   0x7   :  { %p474_p2 = pnand %p472_p1, %p469_p0 }
   0x9   :  { %477 = shalt.err (!%p474_p2)
}
   0xa   :  { %s478_s29 = scalar_lea.vmem %s31_s19, 2048  ;;  %p483_p4 = scmp.lt.s32.totalorder %s31_s19, %s31_s19 }
   0xb   :  { %p479_p3 = scmp.ne.s32.totalorder %s31_s19, %s478_s29  ;;  %p484_p5 = scmp.lt.s32.totalorder %s478_s29, %s478_s29 }
   0xd   :  { %p485_p6 = por %p484_p5, %p483_p4 }
   0xf   :  { %p486_p7 = pnand %p485_p6, %p479_p3 }
  0x11   :  { %489 = shalt.err (!%p486_p7)
}
  0x12   :  { %s564_s30 = smov 128   ;;  %s565_s6 = smov 8  }
  0x13   :  { %36 = dma.hbm_to_vmem [thread:$0]  %s672_s1, 2048, %s31_s19, [#allocation7], %s564_s30, %s564_s30, %s565_s6  }
  0x14   :  { %s490_s11 = scalar_lea.hbm %s671_s0, 256 }
  0x15   :  { %p491_p8 = scmp.ne.s32.totalorder %s671_s0, %s490_s11  ;;  %p494_p9 = scmp.lt.u32.totalorder %s490_s11, %s671_s0 }
  0x17   :  { %p496_p10 = pnand %p494_p9, %p491_p8 }
  0x19   :  { %499 = shalt.err (!%p496_p10)
}
  0x1a   :  { %s500_s16 = scalar_lea.vmem %s598_s21, 256  ;;  %p505_p12 = scmp.lt.s32.totalorder %s598_s21, %s598_s21 }
  0x1b   :  { %p501_p11 = scmp.ne.s32.totalorder %s598_s21, %s500_s16  ;;  %p506_p13 = scmp.lt.s32.totalorder %s500_s16, %s500_s16 }
  0x1d   :  { %p507_p0 = por %p506_p13, %p505_p12 }
  0x1f   :  { %p508_p1 = pnand %p507_p0, %p501_p11 }
  0x21   :  { %511 = shalt.err (!%p508_p1)
}
  0x22   :  { %24 = dma.hbm_to_vmem [thread:$0]  %s671_s0, 256, %s598_s21, [#allocation4], %s564_s30, %s564_s30, %s565_s6  }
  0x23   :  { %s566_s18 = smov [#allocation8]   ;;  %s512_s23 = scalar_lea.hbm %s674_s3, 2048 }
  0x24   :  { %s44_s19 = sshll.u32 %s566_s18, 4  ;;  %p513_p2 = scmp.ne.s32.totalorder %s674_s3, %s512_s23  ;;  %s45_s19 = int_to_ptr.vmem [resolvable:$true] %s44_s19 }
  0x25   :  { %p516_p3 = scmp.lt.u32.totalorder %s512_s23, %s674_s3 }
  0x27   :  { %p518_p4 = pnand %p516_p3, %p513_p2 }
  0x29   :  { %521 = shalt.err (!%p518_p4)
}
  0x2a   :  { %s522_s28 = scalar_lea.vmem %s45_s19, 2048  ;;  %p527_p6 = scmp.lt.s32.totalorder %s45_s19, %s45_s19 }
  0x2b   :  { %p523_p5 = scmp.ne.s32.totalorder %s45_s19, %s522_s28  ;;  %p528_p7 = scmp.lt.s32.totalorder %s522_s28, %s522_s28 }
  0x2d   :  { %p529_p8 = por %p528_p7, %p527_p6 }
  0x2f   :  { %p530_p9 = pnand %p529_p8, %p523_p5 }
  0x31   :  { %533 = shalt.err (!%p530_p9)
}
  0x32   :  { %50 = dma.hbm_to_vmem [thread:$0]  %s674_s3, 2048, %s45_s19, [#allocation7], %s564_s30, %s564_s30, %s565_s6  }
  0x33   :  { %556 = dma.done.wait [#allocation4], 256  }
  0x34   :  { %557 = vsyncadd [#allocation4], 4294967040 }
  0x35   :  { %558 = dma.done.wait [#allocation7], 4096  }
  0x36   :  { %559 = vsyncadd [#allocation7], 4294963200  ;;  %v68_v0 = vld [vmem:[#allocation6] sm:$0xff]  ;;  %v69_v1 = vld [vmem:[#allocation6 + $0x8] sm:$0xff]  ;;  %s567_s9 = smov [#allocation9]  }
  0x37   :  { %v70_v2 = vld [vmem:[#allocation6 + $0x10] sm:$0xff]  ;;  %v398_v3 = vpack.c.bf16 %v69_v1, %v68_v0  ;;  %v71_v4 = vld [vmem:[#allocation6 + $0x18] sm:$0xff]  ;;  %v72_v6 = vld [vmem:[#allocation6 + $0x20] sm:$0xff]  ;;  %s277_s10 = sshll.u32 %s567_s9, 4  ;;  %s278_s10 = int_to_ptr.vmem [resolvable:$true] %s277_s10 }
  0x38   :  { %v402_v5 = vpack.c.bf16 %v71_v4, %v70_v2  ;;  %v73_v7 = vld [vmem:[#allocation6 + $0x28] sm:$0xff]  ;;  %v74_v9 = vld [vmem:[#allocation6 + $0x30] sm:$0xff]  ;;  %v75_v10 = vld [vmem:[#allocation6 + $0x38] sm:$0xff]  ;;  %p539_p11 = scmp.lt.s32.totalorder %s278_s10, %s278_s10 }
  0x39   :  { %399 = vmatprep.subr.bf16.mxu0 %v398_v3  ;;  %v406_v8 = vpack.c.bf16 %v73_v7, %v72_v6  ;;  %v66_v11 = vld [vmem:[#allocation3] sm:$0xff]  ;;  %v172_v12 = vld [vmem:[#allocation8] sm:$0xff]  ;;  %v173_v13 = vld [vmem:[#allocation8 + $0x8] sm:$0xff]  ;;  %v410_v20 = vpack.c.bf16 %v75_v10, %v74_v9 }
  0x3a   :  { %401 = vmatpush3.bf16.msra.mxu0 %v398_v3  ;;  %360 = vmatprep.mubr.f32.mxu0 %v66_v11  ;;  %v174_v14 = vld [vmem:[#allocation8 + $0x10] sm:$0xff]  ;;  %v430_v15 = vpack.c.bf16 %v173_v13, %v172_v12  ;;  %v175_v16 = vld [vmem:[#allocation8 + $0x18] sm:$0xff]  ;;  %v176_v18 = vld [vmem:[#allocation8 + $0x20] sm:$0xff] }
  0x3b   :  { %403 = vmatprep.subr.bf16.mxu0 %v402_v5  ;;  %v434_v17 = vpack.c.bf16 %v175_v16, %v174_v14  ;;  %v177_v19 = vld [vmem:[#allocation8 + $0x28] sm:$0xff]  ;;  %v76_v21 = vld [vmem:[#allocation6 + $0x40] sm:$0xff]  ;;  %v178_v24 = vld [vmem:[#allocation8 + $0x30] sm:$0xff] }
  0x3c   :  { %431 = vmatprep.subr.bf16.mxu1 %v430_v15  ;;  %v77_v22 = vld [vmem:[#allocation6 + $0x48] sm:$0xff]  ;;  %v438_v23 = vpack.c.bf16 %v177_v19, %v176_v18  ;;  %v179_v25 = vld [vmem:[#allocation8 + $0x38] sm:$0xff]  ;;  %v78_v27 = vld [vmem:[#allocation6 + $0x50] sm:$0xff] }
  0x3d   :  { %433 = vmatpush3.bf16.msra.mxu1 %v430_v15  ;;  %v414_v26 = vpack.c.bf16 %v77_v22, %v76_v21  ;;  %v79_v28 = vld [vmem:[#allocation6 + $0x58] sm:$0xff]  ;;  %v442_v29 = vpack.c.bf16 %v179_v25, %v178_v24  ;;  %v180_v30 = vld [vmem:[#allocation8 + $0x40] sm:$0xff]  ;;  %v181_v31 = vld [vmem:[#allocation8 + $0x48] sm:$0xff] }
  0x3e   :  { %405 = vmatpush3.bf16.msra.mxu0 %v402_v5  ;;  %435 = vmatprep.subr.bf16.mxu1 %v434_v17  ;;  %v418_v32 = vpack.c.bf16 %v79_v28, %v78_v27  ;;  %v80_v33 = vld [vmem:[#allocation6 + $0x60] sm:$0xff]  ;;  %v81_v34 = vld [vmem:[#allocation6 + $0x68] sm:$0xff]  ;;  %v446_v35 = vpack.c.bf16 %v181_v31, %v180_v30  ;;  %v182_v36 = vld [vmem:[#allocation8 + $0x50] sm:$0xff] }
  0x3f   :  { %407 = vmatprep.subr.bf16.mxu0 %v406_v8  ;;  %v183_v37 = vld [vmem:[#allocation8 + $0x58] sm:$0xff]  ;;  %v422_v38 = vpack.c.bf16 %v81_v34, %v80_v33  ;;  %v82_v39 = vld [vmem:[#allocation6 + $0x70] sm:$0xff]  ;;  %v184_v42 = vld [vmem:[#allocation8 + $0x60] sm:$0xff] }
  0x40   :  { %v83_v40 = vld [vmem:[#allocation6 + $0x78] sm:$0xff]  ;;  %v450_v41 = vpack.c.bf16 %v183_v37, %v182_v36  ;;  %v185_v43 = vld [vmem:[#allocation8 + $0x68] sm:$0xff]  ;;  %v186_v47 = vld [vmem:[#allocation8 + $0x70] sm:$0xff] }
  0x41   :  { %437 = vmatpush3.bf16.msra.mxu1 %v434_v17  ;;  %v426_v44 = vpack.c.bf16 %v83_v40, %v82_v39  ;;  %v454_v45 = vpack.c.bf16 %v185_v43, %v184_v42  ;;  %v67_v46 = vld [vmem:[#allocation3 + $0x8] sm:$0xff]  ;;  %v290_v50 = vld [vmem:[%s673_s2] ss:$0 sm:$0xff]  ;;  %s534_s2 = scalar_lea.vmem %s278_s10, 256 }
  0x42   :  { %409 = vmatpush3.bf16.msra.mxu0 %v406_v8  ;;  %439 = vmatprep.subr.bf16.mxu1 %v438_v23  ;;  %v187_v48 = vld [vmem:[#allocation8 + $0x78] sm:$0xff]  ;;  %v291_v57 = vld [vmem:[%s675_s4] ss:$0 sm:$0xff]  ;;  %p535_p10 = scmp.ne.s32.totalorder %s278_s10, %s534_s2  ;;  %p540_p12 = scmp.lt.s32.totalorder %s534_s2, %s534_s2 }
  0x43   :  { %411 = vmatprep.subr.bf16.mxu0 %v410_v20  ;;  %v458_v49 = vpack.c.bf16 %v187_v48, %v186_v47 }
  0x44   :  { %p541_p13 = por %p540_p12, %p539_p11 }
  0x45   :  { %441 = vmatpush3.bf16.msra.mxu1 %v438_v23 }
  0x46   :  { %413 = vmatpush3.bf16.msra.mxu0 %v410_v20  ;;  %443 = vmatprep.subr.bf16.mxu1 %v442_v29  ;;  %p542_p0 = pnand %p541_p13, %p535_p10 }
  0x47   :  { %415 = vmatprep.subr.bf16.mxu0 %v414_v26 }
  0x49   :  { %445 = vmatpush3.bf16.msra.mxu1 %v442_v29 }
  0x4a   :  { %417 = vmatpush3.bf16.msra.mxu0 %v414_v26  ;;  %447 = vmatprep.subr.bf16.mxu1 %v446_v35 }
  0x4b   :  { %419 = vmatprep.subr.bf16.mxu0 %v418_v32 }
  0x4d   :  { %449 = vmatpush3.bf16.msra.mxu1 %v446_v35 }
  0x4e   :  { %421 = vmatpush3.bf16.msra.mxu0 %v418_v32  ;;  %451 = vmatprep.subr.bf16.mxu1 %v450_v41 }
  0x4f   :  { %423 = vmatprep.subr.bf16.mxu0 %v422_v38 }
  0x51   :  { %453 = vmatpush3.bf16.msra.mxu1 %v450_v41 }
  0x52   :  { %425 = vmatpush3.bf16.msra.mxu0 %v422_v38  ;;  %455 = vmatprep.subr.bf16.mxu1 %v454_v45 }
  0x53   :  { %427 = vmatprep.subr.bf16.mxu0 %v426_v44 }
  0x55   :  { %457 = vmatpush3.bf16.msra.mxu1 %v454_v45 }
  0x56   :  { %429 = vmatpush3.bf16.msra.mxu0 %v426_v44  ;;  %459 = vmatprep.subr.bf16.mxu1 %v458_v49 }
  0x59   :  { %361 = vmatmul.mubr.f32.vlgmr.msra.gmra.mrb[0].mxu0 %v67_v46  ;;  %461 = vmatpush3.bf16.msra.mxu1 %v458_v49 }
 0x12c   :  { %v362_v51 = vpop.f32.mrb[0].mxu0 }
 0x12d   :  { %v163_v52 = vadd.f32 %v362_v51, %v290_v50  ;;  %v157_v53 = vpop.f32.mrb[1].mxu0 }
 0x12e   :  { %v158_v54 = vadd.f32 %v290_v50, %v157_v53 }
 0x12f   :  { %v167_v56 = vmax.f32 %v163_v52, 0.0 }
 0x130   :  { %v166_v55 = vmax.f32 %v158_v54, 0.0 }
 0x132   :  { %395 = vmatprep.mubr.f32.mxu1 %v166_v55 }
 0x133   :  { %396 = vmatmul.mubr.f32.vlgmr.msra.gmra.mrb[0].mxu1 %v167_v56 }
 0x206   :  { %v397_v58 = vpop.f32.mrb[0].mxu1 }
 0x207   :  { %v267_v59 = vadd.f32 %v397_v58, %v291_v57  ;;  %v261_v60 = vpop.f32.mrb[1].mxu1 }
 0x208   :  { %v262_v61 = vadd.f32 %v291_v57, %v261_v60 }
 0x209   :  { %271 = vst [vmem:[#allocation9 + $0x8] sm:$0xff] %v267_v59 }
 0x20a   :  { %270 = vst [vmem:[#allocation9] sm:$0xff] %v262_v61 }
 0x20b   :  { %545 = shalt.err (!%p542_p0)
}
 0x20c   :  { %s546_s4 = scalar_lea.hbm %s676_s5, 256 }
 0x20d   :  { %p547_p1 = scmp.ne.s32.totalorder %s676_s5, %s546_s4  ;;  %p550_p2 = scmp.lt.u32.totalorder %s546_s4, %s676_s5 }
 0x20f   :  { %p552_p3 = pnand %p550_p2, %p547_p1 }
 0x211   :  { %555 = shalt.err (!%p552_p3)
}
 0x212   :  { %283 = dma.vmem_to_hbm [thread:$0]  %s278_s10, 256, %s676_s5, [#allocation5], %s564_s30, %s564_s30, %s565_s6  }
 0x213   :  { %560 = dma.done.wait [#allocation5], 256  }
 0x214   :  { %561 = vsyncadd [#allocation5], 4294967040 }
 0x215   :  { %287 = vsyncpa [#allocation4], 1 }
 0x216   :  { %288 = vsyncpa [#allocation7], 1 }
 0x217   :  { %289 = vsyncpa [#allocation5], 1 }

// kernel: tpu_custom_call.1
= control target key start
LH: loop header
LB: loop body
LE: loop exit
PB: predicated region body
PF: predicated region fallthrough
CT: control target
= control target key end

     0   :  { %10 = vsyncpa [#allocation4], 0  ;;  %s671_s0 = inlined_call_operand.hbm [shape: f32[16,128], index: 0, kind: input, shape index: {}]   ;;  %s672_s1 = inlined_call_operand.hbm [shape: f32[128,128], index: 1, kind: input, shape index: {}]   ;;  %s673_s2 = inlined_call_operand.vmem [shape: f32[1,128], index: 2, kind: input, shape index: {}]   ;;  %s674_s3 = inlined_call_operand.hbm [shape: f32[128,128], index: 3, kind: input, shape index: {}]   ;;  %s675_s4 = inlined_call_operand.vmem [shape: f32[1,128], index: 4, kind: input, shape index: {}]   ;;  %s676_s5 = inlined_call_operand.hbm [shape: f32[16,128], index: 5, kind: output, shape index: {}]  }
   0x1   :  { %11 = vsyncpa [#allocation7], 0 }
   0x2   :  { %12 = vsyncpa [#allocation5], 0  ;;  %s562_s18 = smov [#allocation6]   ;;  %s563_s20 = smov [#allocation3]  }
   0x3   :  { %s30_s19 = sshll.u32 %s562_s18, 4  ;;  %s18_s21 = sshll.u32 %s563_s20, 4  ;;  %s31_s19 = int_to_ptr.vmem [resolvable:$true] %s30_s19  ;;  %s598_s21 = int_to_ptr.vmem [resolvable:$true] %s18_s21 }
   0x4   :  { %s468_s24 = scalar_lea.hbm %s672_s1, 2048 }
   0x5   :  { %p469_p0 = scmp.ne.s32.totalorder %s672_s1, %s468_s24  ;;  %p472_p1 = scmp.lt.u32.totalorder %s468_s24, %s672_s1 }
   0x7   :  { %p474_p2 = pnand %p472_p1, %p469_p0 }
   0x9   :  { %477 = shalt.err (!%p474_p2)
}
   0xa   :  { %s478_s29 = scalar_lea.vmem %s31_s19, 2048  ;;  %p483_p4 = scmp.lt.s32.totalorder %s31_s19, %s31_s19 }
   0xb   :  { %p479_p3 = scmp.ne.s32.totalorder %s31_s19, %s478_s29  ;;  %p484_p5 = scmp.lt.s32.totalorder %s478_s29, %s478_s29 }
   0xd   :  { %p485_p6 = por %p484_p5, %p483_p4 }
   0xf   :  { %p486_p7 = pnand %p485_p6, %p479_p3 }
  0x11   :  { %489 = shalt.err (!%p486_p7)
}
  0x12   :  { %s564_s30 = smov 128   ;;  %s565_s6 = smov 8  }
  0x13   :  { %36 = dma.hbm_to_vmem [thread:$0]  %s672_s1, 2048, %s31_s19, [#allocation7], %s564_s30, %s564_s30, %s565_s6  }
  0x14   :  { %s490_s11 = scalar_lea.hbm %s671_s0, 256 }
  0x15   :  { %p491_p8 = scmp.ne.s32.totalorder %s671_s0, %s490_s11  ;;  %p494_p9 = scmp.lt.u32.totalorder %s490_s11, %s671_s0 }
  0x17   :  { %p496_p10 = pnand %p494_p9, %p491_p8 }
  0x19   :  { %499 = shalt.err (!%p496_p10)
}
  0x1a   :  { %s500_s16 = scalar_lea.vmem %s598_s21, 256  ;;  %p505_p12 = scmp.lt.s32.totalorder %s598_s21, %s598_s21 }
  0x1b   :  { %p501_p11 = scmp.ne.s32.totalorder %s598_s21, %s500_s16  ;;  %p506_p13 = scmp.lt.s32.totalorder %s500_s16, %s500_s16 }
  0x1d   :  { %p507_p0 = por %p506_p13, %p505_p12 }
  0x1f   :  { %p508_p1 = pnand %p507_p0, %p501_p11 }
  0x21   :  { %511 = shalt.err (!%p508_p1)
}
  0x22   :  { %24 = dma.hbm_to_vmem [thread:$0]  %s671_s0, 256, %s598_s21, [#allocation4], %s564_s30, %s564_s30, %s565_s6  }
  0x23   :  { %s566_s18 = smov [#allocation8]   ;;  %s512_s23 = scalar_lea.hbm %s674_s3, 2048 }
  0x24   :  { %s44_s19 = sshll.u32 %s566_s18, 4  ;;  %p513_p2 = scmp.ne.s32.totalorder %s674_s3, %s512_s23  ;;  %s45_s19 = int_to_ptr.vmem [resolvable:$true] %s44_s19 }
  0x25   :  { %p516_p3 = scmp.lt.u32.totalorder %s512_s23, %s674_s3 }
  0x27   :  { %p518_p4 = pnand %p516_p3, %p513_p2 }
  0x29   :  { %521 = shalt.err (!%p518_p4)
}
  0x2a   :  { %s522_s28 = scalar_lea.vmem %s45_s19, 2048  ;;  %p527_p6 = scmp.lt.s32.totalorder %s45_s19, %s45_s19 }
  0x2b   :  { %p523_p5 = scmp.ne.s32.totalorder %s45_s19, %s522_s28  ;;  %p528_p7 = scmp.lt.s32.totalorder %s522_s28, %s522_s28 }
  0x2d   :  { %p529_p8 = por %p528_p7, %p527_p6 }
  0x2f   :  { %p530_p9 = pnand %p529_p8, %p523_p5 }
  0x31   :  { %533 = shalt.err (!%p530_p9)
}
  0x32   :  { %50 = dma.hbm_to_vmem [thread:$0]  %s674_s3, 2048, %s45_s19, [#allocation7], %s564_s30, %s564_s30, %s565_s6  }
  0x33   :  { %556 = dma.done.wait [#allocation4], 256  }
  0x34   :  { %557 = vsyncadd [#allocation4], 4294967040 }
  0x35   :  { %558 = dma.done.wait [#allocation7], 4096  }
  0x36   :  { %559 = vsyncadd [#allocation7], 4294963200  ;;  %v68_v0 = vld [vmem:[#allocation6] sm:$0xff]  ;;  %v69_v1 = vld [vmem:[#allocation6 + $0x8] sm:$0xff]  ;;  %s567_s9 = smov [#allocation9]  }
  0x37   :  { %v70_v2 = vld [vmem:[#allocation6 + $0x10] sm:$0xff]  ;;  %v398_v3 = vpack.c.bf16 %v69_v1, %v68_v0  ;;  %v71_v4 = vld [vmem:[#allocation6 + $0x18] sm:$0xff]  ;;  %v72_v6 = vld [vmem:[#allocation6 + $0x20] sm:$0xff]  ;;  %s277_s10 = sshll.u32 %s567_s9, 4  ;;  %s278_s10 = int_to_ptr.vmem [resolvable:$true] %s277_s10 }
  0x38   :  { %v402_v5 = vpack.c.bf16 %v71_v4, %v70_v2  ;;  %v73_v7 = vld [vmem:[#allocation6 + $0x28] sm:$0xff]  ;;  %v74_v9 = vld [vmem:[#allocation6 + $0x30] sm:$0xff]  ;;  %v75_v10 = vld [vmem:[#allocation6 + $0x38] sm:$0xff]  ;;  %p539_p11 = scmp.lt.s32.totalorder %s278_s10, %s278_s10 }
  0x39   :  { %399 = vmatprep.subr.bf16.mxu0 %v398_v3  ;;  %v406_v8 = vpack.c.bf16 %v73_v7, %v72_v6  ;;  %v66_v11 = vld [vmem:[#allocation3] sm:$0xff]  ;;  %v172_v12 = vld [vmem:[#allocation8] sm:$0xff]  ;;  %v173_v13 = vld [vmem:[#allocation8 + $0x8] sm:$0xff]  ;;  %v410_v20 = vpack.c.bf16 %v75_v10, %v74_v9 }
  0x3a   :  { %401 = vmatpush3.bf16.msra.mxu0 %v398_v3  ;;  %360 = vmatprep.mubr.f32.mxu0 %v66_v11  ;;  %v174_v14 = vld [vmem:[#allocation8 + $0x10] sm:$0xff]  ;;  %v430_v15 = vpack.c.bf16 %v173_v13, %v172_v12  ;;  %v175_v16 = vld [vmem:[#allocation8 + $0x18] sm:$0xff]  ;;  %v176_v18 = vld [vmem:[#allocation8 + $0x20] sm:$0xff] }
  0x3b   :  { %403 = vmatprep.subr.bf16.mxu0 %v402_v5  ;;  %v434_v17 = vpack.c.bf16 %v175_v16, %v174_v14  ;;  %v177_v19 = vld [vmem:[#allocation8 + $0x28] sm:$0xff]  ;;  %v76_v21 = vld [vmem:[#allocation6 + $0x40] sm:$0xff]  ;;  %v178_v24 = vld [vmem:[#allocation8 + $0x30] sm:$0xff] }
  0x3c   :  { %431 = vmatprep.subr.bf16.mxu1 %v430_v15  ;;  %v77_v22 = vld [vmem:[#allocation6 + $0x48] sm:$0xff]  ;;  %v438_v23 = vpack.c.bf16 %v177_v19, %v176_v18  ;;  %v179_v25 = vld [vmem:[#allocation8 + $0x38] sm:$0xff]  ;;  %v78_v27 = vld [vmem:[#allocation6 + $0x50] sm:$0xff] }
  0x3d   :  { %433 = vmatpush3.bf16.msra.mxu1 %v430_v15  ;;  %v414_v26 = vpack.c.bf16 %v77_v22, %v76_v21  ;;  %v79_v28 = vld [vmem:[#allocation6 + $0x58] sm:$0xff]  ;;  %v442_v29 = vpack.c.bf16 %v179_v25, %v178_v24  ;;  %v180_v30 = vld [vmem:[#allocation8 + $0x40] sm:$0xff]  ;;  %v181_v31 = vld [vmem:[#allocation8 + $0x48] sm:$0xff] }
  0x3e   :  { %405 = vmatpush3.bf16.msra.mxu0 %v402_v5  ;;  %435 = vmatprep.subr.bf16.mxu1 %v434_v17  ;;  %v418_v32 = vpack.c.bf16 %v79_v28, %v78_v27  ;;  %v80_v33 = vld [vmem:[#allocation6 + $0x60] sm:$0xff]  ;;  %v81_v34 = vld [vmem:[#allocation6 + $0x68] sm:$0xff]  ;;  %v446_v35 = vpack.c.bf16 %v181_v31, %v180_v30  ;;  %v182_v36 = vld [vmem:[#allocation8 + $0x50] sm:$0xff] }
  0x3f   :  { %407 = vmatprep.subr.bf16.mxu0 %v406_v8  ;;  %v183_v37 = vld [vmem:[#allocation8 + $0x58] sm:$0xff]  ;;  %v422_v38 = vpack.c.bf16 %v81_v34, %v80_v33  ;;  %v82_v39 = vld [vmem:[#allocation6 + $0x70] sm:$0xff]  ;;  %v184_v42 = vld [vmem:[#allocation8 + $0x60] sm:$0xff] }
  0x40   :  { %v83_v40 = vld [vmem:[#allocation6 + $0x78] sm:$0xff]  ;;  %v450_v41 = vpack.c.bf16 %v183_v37, %v182_v36  ;;  %v185_v43 = vld [vmem:[#allocation8 + $0x68] sm:$0xff]  ;;  %v186_v47 = vld [vmem:[#allocation8 + $0x70] sm:$0xff] }
  0x41   :  { %437 = vmatpush3.bf16.msra.mxu1 %v434_v17  ;;  %v426_v44 = vpack.c.bf16 %v83_v40, %v82_v39  ;;  %v454_v45 = vpack.c.bf16 %v185_v43, %v184_v42  ;;  %v67_v46 = vld [vmem:[#allocation3 + $0x8] sm:$0xff]  ;;  %v290_v50 = vld [vmem:[%s673_s2] ss:$0 sm:$0xff]  ;;  %s534_s2 = scalar_lea.vmem %s278_s10, 256 }
  0x42   :  { %409 = vmatpush3.bf16.msra.mxu0 %v406_v8  ;;  %439 = vmatprep.subr.bf16.mxu1 %v438_v23  ;;  %v187_v48 = vld [vmem:[#allocation8 + $0x78] sm:$0xff]  ;;  %v291_v57 = vld [vmem:[%s675_s4] ss:$0 sm:$0xff]  ;;  %p535_p10 = scmp.ne.s32.totalorder %s278_s10, %s534_s2  ;;  %p540_p12 = scmp.lt.s32.totalorder %s534_s2, %s534_s2 }
  0x43   :  { %411 = vmatprep.subr.bf16.mxu0 %v410_v20  ;;  %v458_v49 = vpack.c.bf16 %v187_v48, %v186_v47 }
  0x44   :  { %p541_p13 = por %p540_p12, %p539_p11 }
  0x45   :  { %441 = vmatpush3.bf16.msra.mxu1 %v438_v23 }
  0x46   :  { %413 = vmatpush3.bf16.msra.mxu0 %v410_v20  ;;  %443 = vmatprep.subr.bf16.mxu1 %v442_v29  ;;  %p542_p0 = pnand %p541_p13, %p535_p10 }
  0x47   :  { %415 = vmatprep.subr.bf16.mxu0 %v414_v26 }
  0x49   :  { %445 = vmatpush3.bf16.msra.mxu1 %v442_v29 }
  0x4a   :  { %417 = vmatpush3.bf16.msra.mxu0 %v414_v26  ;;  %447 = vmatprep.subr.bf16.mxu1 %v446_v35 }
  0x4b   :  { %419 = vmatprep.subr.bf16.mxu0 %v418_v32 }
  0x4d   :  { %449 = vmatpush3.bf16.msra.mxu1 %v446_v35 }
  0x4e   :  { %421 = vmatpush3.bf16.msra.mxu0 %v418_v32  ;;  %451 = vmatprep.subr.bf16.mxu1 %v450_v41 }
  0x4f   :  { %423 = vmatprep.subr.bf16.mxu0 %v422_v38 }
  0x51   :  { %453 = vmatpush3.bf16.msra.mxu1 %v450_v41 }
  0x52   :  { %425 = vmatpush3.bf16.msra.mxu0 %v422_v38  ;;  %455 = vmatprep.subr.bf16.mxu1 %v454_v45 }
  0x53   :  { %427 = vmatprep.subr.bf16.mxu0 %v426_v44 }
  0x55   :  { %457 = vmatpush3.bf16.msra.mxu1 %v454_v45 }
  0x56   :  { %429 = vmatpush3.bf16.msra.mxu0 %v426_v44  ;;  %459 = vmatprep.subr.bf16.mxu1 %v458_v49 }
  0x59   :  { %361 = vmatmul.mubr.f32.vlgmr.msra.gmra.mrb[0].mxu0 %v67_v46  ;;  %461 = vmatpush3.bf16.msra.mxu1 %v458_v49 }
 0x12c   :  { %v362_v51 = vpop.f32.mrb[0].mxu0 }
 0x12d   :  { %v163_v52 = vadd.f32 %v362_v51, %v290_v50  ;;  %v157_v53 = vpop.f32.mrb[1].mxu0 }
 0x12e   :  { %v158_v54 = vadd.f32 %v290_v50, %v157_v53 }
 0x12f   :  { %v167_v56 = vmax.f32 %v163_v52, 0.0 }
 0x130   :  { %v166_v55 = vmax.f32 %v158_v54, 0.0 }
 0x132   :  { %395 = vmatprep.mubr.f32.mxu1 %v166_v55 }
 0x133   :  { %396 = vmatmul.mubr.f32.vlgmr.msra.gmra.mrb[0].mxu1 %v167_v56 }
 0x206   :  { %v397_v58 = vpop.f32.mrb[0].mxu1 }
 0x207   :  { %v267_v59 = vadd.f32 %v397_v58, %v291_v57  ;;  %v261_v60 = vpop.f32.mrb[1].mxu1 }
 0x208   :  { %v262_v61 = vadd.f32 %v291_v57, %v261_v60 }
 0x209   :  { %271 = vst [vmem:[#allocation9 + $0x8] sm:$0xff] %v267_v59 }
 0x20a   :  { %270 = vst [vmem:[#allocation9] sm:$0xff] %v262_v61 }
 0x20b   :  { %545 = shalt.err (!%p542_p0)
}
 0x20c   :  { %s546_s4 = scalar_lea.hbm %s676_s5, 256 }
 0x20d   :  { %p547_p1 = scmp.ne.s32.totalorder %s676_s5, %s546_s4  ;;  %p550_p2 = scmp.lt.u32.totalorder %s546_s4, %s676_s5 }
 0x20f   :  { %p552_p3 = pnand %p550_p2, %p547_p1 }
 0x211   :  { %555 = shalt.err (!%p552_p3)
}
 0x212   :  { %283 = dma.vmem_to_hbm [thread:$0]  %s278_s10, 256, %s676_s5, [#allocation5], %s564_s30, %s564_s30, %s565_s6  }
 0x213   :  { %560 = dma.done.wait [#allocation5], 256  }
 0x214   :  { %561 = vsyncadd [#allocation5], 4294967040 }
 0x215   :  { %287 = vsyncpa [#allocation4], 1 }
 0x216   :  { %288 = vsyncpa [#allocation7], 1 }
 0x217   :  { %289 = vsyncpa [#allocation5], 1 }

</bundles_post_ra>
